<compile_context>
chip_gen: v7x
topology: tpu7x:2x2x1
jax: 0.10.0
libtpu: 0.0.40
codegen_flags: <defaults>
</compile_context>

<pallas_src>
import functools
import math

import jax
import jax.numpy as jnp
from jax import lax
from jax.experimental import pallas as pl
from jax.experimental.pallas import tpu as pltpu


def _round_up(x: int, m: int) -> int:
    return (x + m - 1) // m * m


def _token_embedding_kernel(ids_ref, table_hbm, out_ref, buf, sem, *,
                            scale: float, tile: int, vocab_size: int):
    # ids_ref:   (n_pad,)            int32, SMEM (scalar-prefetched flattened token ids)
    # table_hbm: (v_pad, e_pad)      table left in HBM (pl.ANY) — never VMEM-resident
    # out_ref:   (tile, e_pad)       VMEM output block (auto-pipelined writeback)
    # buf:       (2, tile, e_pad)    VMEM gather double-buffer
    # sem:       (2,)                DMA semaphores, one per slot (all row DMAs share it)
    i = pl.program_id(0)
    nsteps = pl.num_programs(0)

    def issue_gather(step, slot):
        base = step * tile

        def body(r, carry):
            tok = ids_ref[base + r]
            # Clamp out-of-range ids (PyTorch raises; clamping keeps the DMA in bounds).
            tok = jnp.minimum(jnp.maximum(tok, 0), vocab_size - 1)
            pltpu.make_async_copy(
                table_hbm.at[pl.ds(tok, 1), :],      # one (1, e_pad) row from HBM
                buf.at[slot, pl.ds(r, 1), :],        # into row r of the slot buffer
                sem.at[slot],                        # shared per-slot semaphore
            ).start()
            return carry

        lax.fori_loop(0, tile, body, 0)

    def wait_gather(slot):
        # All `tile` row DMAs of this slot signal the same semaphore; one wait sized for
        # the full (tile, e_pad) buffer waits for all of them (src is a dummy, size only).
        pltpu.make_async_copy(
            table_hbm.at[pl.ds(0, tile), :],
            buf.at[slot],
            sem.at[slot],
        ).wait()

    # Prime the pipeline on the first step.
    @pl.when(i == 0)
    def _():
        issue_gather(0, 0)

    # Prefetch the next tile of rows into the other slot while we consume this one.
    @pl.when(i + 1 < nsteps)
    def _():
        issue_gather(i + 1, (i + 1) % 2)

    slot = i % 2
    wait_gather(slot)
    # Fold the sqrt(emb_size) scale into the store (hides under the DMAs).
    out_ref[...] = (buf[slot] * scale).astype(out_ref.dtype)


def token_embedding(tokens: jax.Array, table: jax.Array, *, tile: int = 256) -> jax.Array:
    """Equivalent of TokenEmbedding.forward: embedding(tokens.long()) * sqrt(emb_size)."""
    vocab_size, emb_size = table.shape
    scale = math.sqrt(emb_size)
    out_dtype = table.dtype

    orig_shape = tokens.shape
    ids = tokens.astype(jnp.int32).reshape(-1)
    n = ids.shape[0]

    # Lane-dense output: pad embedding width to a multiple of 128.
    e_pad = _round_up(emb_size, 128)
    # Pad vocab rows to a multiple of 8 (keeps the aggregated-wait dummy slice in bounds).
    v_pad = max(_round_up(vocab_size, 8), 8)
    table_p = table
    if (v_pad, e_pad) != (vocab_size, emb_size):
        table_p = jnp.pad(table, ((0, v_pad - vocab_size), (0, e_pad - emb_size)))

    # Token tile: as large as possible (>=256 amortizes per-grid-step overhead) while
    # keeping 2x gather buffers + 2x pipelined output blocks inside a conservative
    # VMEM budget (safe even for v5e's 16 MiB default scoped limit / v7x's 64 MiB VMEM).
    itemsize = jnp.dtype(out_dtype).itemsize
    bytes_per_row = e_pad * itemsize * 4            # 2 buf slots + 2 output buffers
    budget = 8 * 1024 * 1024
    tile = min(tile, max(8, (budget // bytes_per_row) // 8 * 8))
    tile = min(tile, _round_up(n, 8))               # don't over-pad tiny token counts
    tile = min(tile, v_pad)                         # dummy wait slice uses `tile` table rows
    tile = max(8, (tile // 8) * 8)

    n_pad = _round_up(n, tile)
    if n_pad != n:
        ids = jnp.pad(ids, (0, n_pad - n))          # pad ids with 0 (valid row; sliced off)

    grid = (n_pad // tile,)

    kernel = functools.partial(
        _token_embedding_kernel, scale=scale, tile=tile, vocab_size=vocab_size)

    out = pl.pallas_call(
        kernel,
        out_shape=jax.ShapeDtypeStruct((n_pad, e_pad), out_dtype),
        grid_spec=pltpu.PrefetchScalarGridSpec(
            num_scalar_prefetch=1,                           # token ids -> SMEM
            grid=grid,
            in_specs=[pl.BlockSpec(memory_space=pl.ANY)],    # table stays in HBM
            out_specs=pl.BlockSpec((tile, e_pad), lambda i, ids: (i, 0)),
            scratch_shapes=[
                pltpu.VMEM((2, tile, e_pad), out_dtype),     # gather double-buffer
                pltpu.SemaphoreType.DMA((2,)),               # one DMA sem per slot
            ],
        ),
        compiler_params=pltpu.CompilerParams(
            # Cross-step double-buffering carries a dependence between grid steps.
            dimension_semantics=("arbitrary",),
        ),
    )(ids, table_p)

    out = out[:n, :emb_size]
    return out.reshape(*orig_shape, emb_size)


if __name__ == "__main__":
    key = jax.random.PRNGKey(0)
    k_tab, k_tok = jax.random.split(key)

    vocab_size = 512
    emb_size = 128          # multiple of 128 -> lane-dense stores (no padding needed)
    batch, seq = 2, 8

    # nn.Embedding default init: weight ~ N(0, 1). Deterministic synthetic params.
    table = jax.random.normal(k_tab, (vocab_size, emb_size), dtype=jnp.float32)
    tokens = jax.random.randint(k_tok, (batch, seq), 0, vocab_size, dtype=jnp.int32)

    out = token_embedding(tokens, table)
    out = jax.block_until_ready(out)

    # Reference check (pure JAX)
    ref = table[tokens] * math.sqrt(emb_size)
    assert out.shape == (batch, seq, emb_size)
    assert jnp.allclose(out, ref, atol=1e-5, rtol=1e-5)

    print("KERNEL_OK")
</pallas_src>

<mosaic_0001>
module attributes {stable_mosaic.version = 11 : i64} {
  func.func @_token_embedding_kernel(%arg0: i32, %arg1: memref<16xi32, #tpu.memory_space<smem>>, %arg2: memref<512x128xf32, #tpu.memory_space<any>>, %arg3: memref<16x128xf32, #tpu.memory_space<vmem>>, %arg4: memref<2x16x128xf32, #tpu.memory_space<vmem>>, %arg5: memref<2x!tpu.dma_semaphore, #tpu.memory_space<semaphore_mem>>) attributes {dimension_semantics = [#tpu.dimension_semantics<arbitrary>], iteration_bounds = array<i64: 1>, scalar_prefetch = 1 : i64, scratch_operands = 2 : i64, tpu.core_type = #tpu.core_type<tc>, window_params = [{}, {transform_indices = @transform_1, window_bounds = array<i64: 16, 128>}]} {
    %c0_i32 = arith.constant 0 : i32
    %0 = arith.cmpi eq, %arg0, %c0_i32 : i32
    %1 = arith.extui %0 : i1 to i32
    %c0_i32_0 = arith.constant 0 : i32
    %2 = arith.cmpi ne, %1, %c0_i32_0 : i32
    scf.if %2 {
      %c0_i32_15 = arith.constant 0 : i32
      %c16_i32 = arith.constant 16 : i32
      %28 = arith.addi %c0_i32_15, %c16_i32 : i32
      %c1_i32_16 = arith.constant 1 : i32
      scf.for %arg6 = %c0_i32_15 to %28 step %c1_i32_16  : i32 {
        %c0_i32_18 = arith.constant 0 : i32
        %29 = arith.addi %c0_i32_18, %arg6 : i32
        %30 = arith.index_cast %29 : i32 to index
        %31 = memref.load %arg1[%30] : memref<16xi32, #tpu.memory_space<smem>>
        %c0_i32_19 = arith.constant 0 : i32
        %32 = arith.maxsi %31, %c0_i32_19 : i32
        %c511_i32 = arith.constant 511 : i32
        %33 = arith.minsi %32, %c511_i32 : i32
        %c0_i32_20 = arith.constant 0 : i32
        %c0_i32_21 = arith.constant 0 : i32
        %c0_i32_22 = arith.constant 0 : i32
        %34 = tpu.memref_slice %arg2[%33, %c0_i32_22] : memref<512x128xf32, #tpu.memory_space<any>> -> memref<1x128xf32, #tpu.memory_space<any>>
        %c0_i32_23 = arith.constant 0 : i32
        %35 = tpu.memref_slice %arg4[%c0_i32_20, %arg6, %c0_i32_23] : memref<2x16x128xf32, #tpu.memory_space<vmem>> -> memref<1x1x128xf32, #tpu.memory_space<vmem>>
        %36 = tpu.memref_squeeze %35 : memref<1x1x128xf32, #tpu.memory_space<vmem>> -> memref<1x128xf32, #tpu.memory_space<vmem>>
        %37 = tpu.memref_slice %arg5[%c0_i32_21] : memref<2x!tpu.dma_semaphore, #tpu.memory_space<semaphore_mem>> -> memref<1x!tpu.dma_semaphore, #tpu.memory_space<semaphore_mem>>
        %38 = tpu.memref_squeeze %37 : memref<1x!tpu.dma_semaphore, #tpu.memory_space<semaphore_mem>> -> memref<!tpu.dma_semaphore, #tpu.memory_space<semaphore_mem>>
        tpu.enqueue_dma source(%34 : memref<1x128xf32, #tpu.memory_space<any>>) target(%36 : memref<1x128xf32, #tpu.memory_space<vmem>>) target_semaphore(%38 : memref<!tpu.dma_semaphore, #tpu.memory_space<semaphore_mem>>)
      }
      %c16_i32_17 = arith.constant 16 : i32
    } else {
    }
    %c1_i32 = arith.constant 1 : i32
    %3 = arith.addi %arg0, %c1_i32 : i32
    %c1_i32_1 = arith.constant 1 : i32
    %4 = arith.cmpi slt, %3, %c1_i32_1 : i32
    %5 = arith.extui %4 : i1 to i32
    %c0_i32_2 = arith.constant 0 : i32
    %6 = arith.cmpi ne, %5, %c0_i32_2 : i32
    scf.if %6 {
      %c1_i32_15 = arith.constant 1 : i32
      %28 = arith.addi %arg0, %c1_i32_15 : i32
      %c1_i32_16 = arith.constant 1 : i32
      %29 = arith.addi %arg0, %c1_i32_16 : i32
      %c2_i32_17 = arith.constant 2 : i32
      %c0_i32_18 = arith.constant 0 : i32
      %30 = arith.cmpi eq, %c2_i32_17, %c0_i32_18 : i32
      %c1_i32_19 = arith.constant 1 : i32
      %31 = arith.select %30, %c1_i32_19, %c2_i32_17 : i32
      %32 = arith.remsi %29, %31 : i32
      %c0_i32_20 = arith.constant 0 : i32
      %33 = arith.cmpi ne, %32, %c0_i32_20 : i32
      %c0_i32_21 = arith.constant 0 : i32
      %34 = arith.cmpi slt, %32, %c0_i32_21 : i32
      %c0_i32_22 = arith.constant 0 : i32
      %35 = arith.cmpi slt, %31, %c0_i32_22 : i32
      %36 = arith.xori %34, %35 : i1
      %37 = arith.andi %36, %33 : i1
      %38 = arith.addi %32, %31 : i32
      %39 = arith.select %37, %38, %32 : i32
      %c16_i32 = arith.constant 16 : i32
      %40 = arith.muli %28, %c16_i32 : i32
      %c0_i32_23 = arith.constant 0 : i32
      %c16_i32_24 = arith.constant 16 : i32
      %41 = arith.addi %c0_i32_23, %c16_i32_24 : i32
      %c1_i32_25 = arith.constant 1 : i32
      scf.for %arg6 = %c0_i32_23 to %41 step %c1_i32_25  : i32 {
        %42 = arith.addi %40, %arg6 : i32
        %43 = arith.index_cast %42 : i32 to index
        %44 = memref.load %arg1[%43] : memref<16xi32, #tpu.memory_space<smem>>
        %c0_i32_27 = arith.constant 0 : i32
        %45 = arith.maxsi %44, %c0_i32_27 : i32
        %c511_i32 = arith.constant 511 : i32
        %46 = arith.minsi %45, %c511_i32 : i32
        %c0_i32_28 = arith.constant 0 : i32
        %47 = tpu.memref_slice %arg2[%46, %c0_i32_28] : memref<512x128xf32, #tpu.memory_space<any>> -> memref<1x128xf32, #tpu.memory_space<any>>
        %c0_i32_29 = arith.constant 0 : i32
        %48 = tpu.memref_slice %arg4[%39, %arg6, %c0_i32_29] : memref<2x16x128xf32, #tpu.memory_space<vmem>> -> memref<1x1x128xf32, #tpu.memory_space<vmem>>
        %49 = tpu.memref_squeeze %48 : memref<1x1x128xf32, #tpu.memory_space<vmem>> -> memref<1x128xf32, #tpu.memory_space<vmem>>
        %50 = tpu.memref_slice %arg5[%39] : memref<2x!tpu.dma_semaphore, #tpu.memory_space<semaphore_mem>> -> memref<1x!tpu.dma_semaphore, #tpu.memory_space<semaphore_mem>>
        %51 = tpu.memref_squeeze %50 : memref<1x!tpu.dma_semaphore, #tpu.memory_space<semaphore_mem>> -> memref<!tpu.dma_semaphore, #tpu.memory_space<semaphore_mem>>
        tpu.enqueue_dma source(%47 : memref<1x128xf32, #tpu.memory_space<any>>) target(%49 : memref<1x128xf32, #tpu.memory_space<vmem>>) target_semaphore(%51 : memref<!tpu.dma_semaphore, #tpu.memory_space<semaphore_mem>>)
      }
      %c16_i32_26 = arith.constant 16 : i32
    } else {
    }
    %c2_i32 = arith.constant 2 : i32
    %c0_i32_3 = arith.constant 0 : i32
    %7 = arith.cmpi eq, %c2_i32, %c0_i32_3 : i32
    %c1_i32_4 = arith.constant 1 : i32
    %8 = arith.select %7, %c1_i32_4, %c2_i32 : i32
    %9 = arith.remsi %arg0, %8 : i32
    %c0_i32_5 = arith.constant 0 : i32
    %10 = arith.cmpi ne, %9, %c0_i32_5 : i32
    %c0_i32_6 = arith.constant 0 : i32
    %11 = arith.cmpi slt, %9, %c0_i32_6 : i32
    %c0_i32_7 = arith.constant 0 : i32
    %12 = arith.cmpi slt, %8, %c0_i32_7 : i32
    %13 = arith.xori %11, %12 : i1
    %14 = arith.andi %13, %10 : i1
    %15 = arith.addi %9, %8 : i32
    %16 = arith.select %14, %15, %9 : i32
    %c0_i32_8 = arith.constant 0 : i32
    %c0_i32_9 = arith.constant 0 : i32
    %17 = tpu.memref_slice %arg2[%c0_i32_8, %c0_i32_9] : memref<512x128xf32, #tpu.memory_space<any>> -> memref<16x128xf32, #tpu.memory_space<any>>
    %c0_i32_10 = arith.constant 0 : i32
    %c0_i32_11 = arith.constant 0 : i32
    %18 = tpu.memref_slice %arg4[%16, %c0_i32_10, %c0_i32_11] : memref<2x16x128xf32, #tpu.memory_space<vmem>> -> memref<1x16x128xf32, #tpu.memory_space<vmem>>
    %19 = tpu.memref_squeeze %18 : memref<1x16x128xf32, #tpu.memory_space<vmem>> -> memref<16x128xf32, #tpu.memory_space<vmem>>
    %20 = tpu.memref_slice %arg5[%16] : memref<2x!tpu.dma_semaphore, #tpu.memory_space<semaphore_mem>> -> memref<1x!tpu.dma_semaphore, #tpu.memory_space<semaphore_mem>>
    %21 = tpu.memref_squeeze %20 : memref<1x!tpu.dma_semaphore, #tpu.memory_space<semaphore_mem>> -> memref<!tpu.dma_semaphore, #tpu.memory_space<semaphore_mem>>
    tpu.wait_dma2 semaphore(%21 : memref<!tpu.dma_semaphore, #tpu.memory_space<semaphore_mem>>) src(%17 : memref<16x128xf32, #tpu.memory_space<any>>) dst(%19 : memref<16x128xf32, #tpu.memory_space<vmem>>)
    %22 = arith.index_cast %16 : i32 to index
    %c0 = arith.constant 0 : index
    %c0_12 = arith.constant 0 : index
    %23 = vector.load %arg4[%22, %c0, %c0_12] : memref<2x16x128xf32, #tpu.memory_space<vmem>>, vector<1x16x128xf32>
    %24 = vector.shape_cast %23 : vector<1x16x128xf32> to vector<16x128xf32>
    %cst = arith.constant 11.3137083 : f32
    %25 = vector.broadcast %cst : f32 to vector<16x128xf32>
    %26 = arith.mulf %24, %25 : vector<16x128xf32>
    %c0_13 = arith.constant 0 : index
    %c0_14 = arith.constant 0 : index
    %27 = vector.load %arg3[%c0_13, %c0_14] : memref<16x128xf32, #tpu.memory_space<vmem>>, vector<16x128xf32>
    tpu.vector_store %arg3[%c0_13, %c0_14], %26 {strides = array<i32>} : memref<16x128xf32, #tpu.memory_space<vmem>>, vector<16x128xf32>,
    return
  }
  func.func @transform_1(%arg0: i32, %arg1: memref<16xi32, #tpu.memory_space<smem>>) -> (i32, i32) {
    %c0_i32 = arith.constant 0 : i32
    %c0_i32_0 = arith.constant 0 : i32
    return %arg0, %c0_i32 : i32, i32
  }
}

</mosaic_0001>

<bundles_post_ra>
// kernel: tpu_custom_call.1
= control target key start
LH: loop header
LB: loop body
LE: loop exit
PB: predicated region body
PF: predicated region fallthrough
CT: control target
= control target key end

     0   :  { %s325_s0 = inlined_call_operand.hbm [shape: s32[16], index: 0, kind: input, shape index: {}]   ;;  %s326_s1 = inlined_call_operand.hbm [shape: f32[512,128], index: 1, kind: input, shape index: {}]   ;;  %s327_s2 = inlined_call_operand.hbm [shape: f32[16,128], index: 2, kind: output, shape index: {}]  }
   0x1   :  { %s192_s11 = scalar_lea.hbm %s325_s0, 16 }
   0x2   :  { %p193_p0 = scmp.ne.s32.totalorder %s325_s0, %s192_s11  ;;  %p196_p1 = scmp.lt.u32.totalorder %s192_s11, %s325_s0 }
   0x4   :  { %p198_p2 = pnand %p196_p1, %p193_p0 }
   0x6   :  { %201 = shalt.err (!%p198_p2)  }
   0x7   :  { %s262_s16 = smov [#allocation5]  }
   0x8   :  { %8 = dma.hbm_to_smem %s325_s0, 16, %s262_s16, [#allocation4] }
   0x9   :  { %252 = dma.done.wait [#allocation4], 16 }
   0xa   :  { %253 = vsyncadd [#allocation4], 4294967280 }
   0xb   :  { %10 = sfence }
   0xc   :  { %11 = vsyncpa [#allocation7], 0  ;;  %s294_s19 = smov 0  }
   0xd LB: > { %s22_s20 = sld [smem:[#allocation5 + %s260_s19]]  ;;  %s29_s21 = scalar_lea.vmem [#allocation2], %s260_s19  ;;  %s260_s19 = sphi %s294_s19, %s21_s19  }
   0xe   : > { %s37_s22 = sshll.u32 %s29_s21, 4  ;;  %s204_s29 = scalar_lea.hbm %s326_s1, 8192  ;;  %s38_s22 = int_to_ptr.vmem [resolvable:$true] %s37_s22 }
  0x13   : > { %p23_p3 = scmp.gt.s32.totalorder %s22_s20, 0  ;;  %p159_p4 = scmp.lt.s32.totalorder %s22_s20, 511 }
  0x15   : > { %s329_s20 = smov (!%p23_p3, %s22_s20), 0 }
  0x16   : > { %s331_s20 = smov (!%p159_p4, %s329_s20), 511 }
  0x17   : > { %s164_s0 = sshll.u32 %s331_s20, 4 }
  0x18   : > { %s28_s25 = scalar_lea.hbm %s326_s1, %s164_s0 }
  0x19   : > { %s202_s26 = scalar_lea.hbm %s28_s25, 16  ;;  %p205_p6 = scmp.lt.u32.totalorder %s28_s25, %s326_s1 }
  0x1a   : > { %p203_p5 = scmp.ne.s32.totalorder %s28_s25, %s202_s26  ;;  %p206_p7 = scmp.lt.u32.totalorder %s204_s29, %s202_s26 }
  0x1b   : > { %p208_p9 = scmp.lt.u32.totalorder %s202_s26, %s28_s25 }
  0x1c   : > { %p207_p8 = por %p206_p7, %p205_p6 }
  0x1e   : > { %p209_p10 = por %p208_p9, %p207_p8 }
  0x20   : > { %p210_p11 = pnand %p209_p10, %p203_p5 }
  0x22   : > { %213 = shalt.err (!%p210_p11)  }
  0x23   : > { %s214_s4 = scalar_lea.vmem %s38_s22, 16  ;;  %s263_s5 = smov [#allocation2]  }
  0x24   : > { %p215_p12 = scmp.ne.s32.totalorder %s38_s22, %s214_s4  ;;  %s216_s6 = sshll.u32 %s263_s5, 4  ;;  %s217_s6 = int_to_ptr.vmem [resolvable:$false] %s216_s6 }
  0x25   : > { %s218_s7 = scalar_lea.vmem %s217_s6, 512  ;;  %p219_p13 = scmp.lt.s32.totalorder %s38_s22, %s217_s6 }
  0x26   : > { %p220_p0 = scmp.lt.s32.totalorder %s218_s7, %s214_s4 }
  0x28   : > { %p221_p1 = por %p220_p0, %p219_p13 }
  0x2a   : > { %p222_p2 = pnand %p221_p1, %p215_p12 }
  0x2c   : > { %225 = shalt.err (!%p222_p2)  }
  0x2d   : > { %40 = dma.hbm_to_vmem [thread:$0]  %s28_s25, 16, %s38_s22, [#allocation3] }
  0x2e   : > { %s21_s19 = sadd.s32 1, %s260_s19  }
  0x2f   : > { %p18_p3 = scmp.ge.s32.totalorder %s21_s19, 16  }
  0x31   :  { %20 = sbr.rel (!%p18_p3) target bundleno = 13 (0xd), region = 58 }
  0x38   :  { %254 = dma.done.wait [#allocation3], 256 }
  0x39   :  { %255 = vsyncadd [#allocation3], 4294967040  ;;  %s264_s8 = smov [#allocation6]   ;;  %v102_v0 = vld [vmem:[#allocation2] sm:$0xff]  ;;  %v103_v1 = vld [vmem:[#allocation2 + $0x8] sm:$0xff] }
  0x3a   :  { %s113_s9 = sshll.u32 %s264_s8, 4  ;;  %v104_v2 = vmul.f32 11.313708, %v102_v0  ;;  %v105_v3 = vmul.f32 11.313708, %v103_v1  ;;  %s114_s9 = int_to_ptr.vmem [resolvable:$true] %s113_s9 }
  0x3b   :  { %s226_s10 = scalar_lea.vmem %s114_s9, 256  ;;  %p231_p5 = scmp.lt.s32.totalorder %s114_s9, %s114_s9 }
  0x3c   :  { %106 = vst [vmem:[#allocation6] sm:$0xff] %v104_v2  ;;  %107 = vst [vmem:[#allocation6 + $0x8] sm:$0xff] %v105_v3  ;;  %p227_p4 = scmp.ne.s32.totalorder %s114_s9, %s226_s10  ;;  %p232_p6 = scmp.lt.s32.totalorder %s226_s10, %s226_s10 }
  0x3e   :  { %p233_p7 = por %p232_p6, %p231_p5 }
  0x40   :  { %p234_p8 = pnand %p233_p7, %p227_p4 }
  0x42   :  { %237 = shalt.err (!%p234_p8)
}
  0x43   :  { %s238_s1 = scalar_lea.hbm %s327_s2, 256 }
  0x44   :  { %p239_p9 = scmp.ne.s32.totalorder %s327_s2, %s238_s1  ;;  %p242_p10 = scmp.lt.u32.totalorder %s238_s1, %s327_s2 }
  0x46   :  { %p244_p11 = pnand %p242_p10, %p239_p9 }
  0x48   :  { %247 = shalt.err (!%p244_p11)
}
  0x49   :  { %s265_s17 = smov 128   ;;  %s266_s18 = smov 8  }
  0x4a   :  { %119 = dma.vmem_to_hbm [thread:$0]  %s114_s9, 256, %s327_s2, [#allocation7], %s265_s17, %s265_s17, %s266_s18  }
  0x4b   :  { %256 = dma.done.wait [#allocation7], 256  }
  0x4c   :  { %257 = vsyncadd [#allocation7], 4294967040 }
  0x4d   :  { %123 = vsyncpa [#allocation7], 1 }
  0x4e   :  { %124 = vsyncmov [#allocation3] }
  0x51   :  { %s125_s21 = vpop.sfrf %124 }
  0x52   :  { %p172_p12 = scmp.ne.s32.totalorder %s125_s21, 0 }
  0x54   :  { %129 = shalt.err (%p172_p12)  }
  0x55   :  { %131 = vsyncmov [#allocation3 + $0x1] }
  0x58   :  { %s132_s22 = vpop.sfrf %131 }
  0x59   :  { %p173_p13 = scmp.ne.s32.totalorder %s132_s22, 0 }
  0x5b   :  { %136 = shalt.err (%p173_p13)  }

</bundles_post_ra>
